<compile_context>
chip_gen: v5e
topology: v5e:2x2
jax: 0.10.0
libtpu: 0.0.40
codegen_flags: <defaults>
</compile_context>

<pallas_src>
import functools
import math

import jax
import jax.numpy as jnp
from jax.experimental import pallas as pl
from jax.experimental.pallas import tpu as pltpu


def _softmax_kernel(x_ref, o_ref, *, c):
    # Block shape: (1, C, TILE_HW). Reduction over the channel axis (axis=1)
    # is fully contained in the block.
    x = x_ref[...].astype(jnp.float32) * c
    x = jnp.clip(x, -88.7, 88.7)
    e = jnp.exp(x)
    denom = jnp.sum(e, axis=1, keepdims=True)
    # Exact reciprocal: approx=True (~2^-12 rel err) would exceed 1e-5 rtol.
    out = e * pl.reciprocal(denom, approx=False)
    o_ref[...] = out.astype(o_ref.dtype)


def _choose_tile_hw(hw, c, dtype_bytes, *, vmem_budget_bytes=8 * 1024 * 1024,
                    max_tile=2048):
    """Pick a lane-dense spatial tile that fits conservative VMEM budgets.

    Accounts for sublane padding (C rounds up to a multiple of 8) and the
    2x input + 2x output double-buffers the BlockSpec pipeline allocates.
    The 8 MiB budget is safe on v5e (16 MiB default scoped), v6e (32 MiB)
    and v7x (32 MiB scoped / 64 MiB physical).
    """
    c_pad = ((c + 7) // 8) * 8
    per_lane_col_bytes = 4 * c_pad * dtype_bytes  # 4 buffers (2 in + 2 out)
    max_by_vmem = max(128, vmem_budget_bytes // per_lane_col_bytes)
    tile = min(max_tile, max_by_vmem)
    tile = max(128, (tile // 128) * 128)          # multiple of 128 lanes
    hw_128 = ((hw + 127) // 128) * 128
    tile = min(tile, hw_128)                      # don't over-tile tiny inputs
    return tile


def softmax_pallas(x, constant):
    """x: (N, C, H, W). Softmax over the channel axis (axis=1)."""
    N, C, H, W = x.shape
    HW = H * W
    dtype_bytes = jnp.dtype(x.dtype).itemsize

    tile_hw = _choose_tile_hw(HW, C, dtype_bytes)
    hw_pad = ((HW + tile_hw - 1) // tile_hw) * tile_hw
    num_hw_tiles = hw_pad // tile_hw

    xr = x.reshape(N, C, HW)
    if hw_pad != HW:
        # Zero-pad the spatial axis so every block is full and 128-aligned
        # (lane-dense, unmasked stores). Padded columns compute a harmless
        # uniform softmax and are sliced off below.
        xr = jnp.pad(xr, ((0, 0), (0, 0), (0, hw_pad - HW)))

    out = pl.pallas_call(
        functools.partial(_softmax_kernel, c=constant),
        out_shape=jax.ShapeDtypeStruct((N, C, hw_pad), x.dtype),
        grid=(N, num_hw_tiles),
        in_specs=[pl.BlockSpec((1, C, tile_hw), lambda n, j: (n, 0, j))],
        out_specs=pl.BlockSpec((1, C, tile_hw), lambda n, j: (n, 0, j)),
        compiler_params=pltpu.CompilerParams(
            dimension_semantics=("parallel", "parallel"),
        ),
    )(xr)

    if hw_pad != HW:
        out = out[:, :, :HW]
    return out.reshape(N, C, H, W)


def softmax_ref(x, constant):
    e = jnp.exp(jnp.clip(x * constant, -88.7, 88.7))
    return e / jnp.sum(e, axis=1, keepdims=True)


if __name__ == "__main__":
    key = jax.random.PRNGKey(0)
    N, C, H, W = 2, 4, 16, 16
    constant = 2.5  # the `constant` passed to SoftMax.__init__

    x = jax.random.normal(key, (N, C, H, W), dtype=jnp.float32) * 3.0

    y = softmax_pallas(x, constant)
    y = jax.block_until_ready(y)

    y_ref = softmax_ref(x, constant)
    assert y.shape == (N, C, H, W)
    assert jnp.allclose(y, y_ref, atol=1e-5, rtol=1e-5), "mismatch vs reference"

    print("KERNEL_OK")
</pallas_src>

<mosaic_0001>
module attributes {stable_mosaic.version = 11 : i64} {
  func.func @_softmax_kernel(%arg0: i32, %arg1: i32, %arg2: memref<1x4x256xf32, #tpu.memory_space<vmem>>, %arg3: memref<1x4x256xf32, #tpu.memory_space<vmem>>) attributes {dimension_semantics = [#tpu.dimension_semantics<parallel>, #tpu.dimension_semantics<parallel>], iteration_bounds = array<i64: 2, 1>, scalar_prefetch = 0 : i64, scratch_operands = 0 : i64, tpu.core_type = #tpu.core_type<tc>, window_params = [{transform_indices = @transform_0, window_bounds = array<i64: 1, 4, 256>}, {transform_indices = @transform_1, window_bounds = array<i64: 1, 4, 256>}]} {
    %c0 = arith.constant 0 : index
    %c0_0 = arith.constant 0 : index
    %c0_1 = arith.constant 0 : index
    %0 = vector.load %arg2[%c0, %c0_0, %c0_1] : memref<1x4x256xf32, #tpu.memory_space<vmem>>, vector<1x4x256xf32>
    %cst = arith.constant 2.500000e+00 : f32
    %1 = vector.broadcast %cst : f32 to vector<1x4x256xf32>
    %2 = arith.mulf %0, %1 : vector<1x4x256xf32>
    %cst_2 = arith.constant -88.6999969 : f32
    %cst_3 = arith.constant 88.6999969 : f32
    %3 = vector.broadcast %cst_2 : f32 to vector<1x4x256xf32>
    %4 = arith.maximumf %3, %2 : vector<1x4x256xf32>
    %5 = vector.broadcast %cst_3 : f32 to vector<1x4x256xf32>
    %6 = arith.minimumf %5, %4 : vector<1x4x256xf32>
    %7 = math.exp %6 : vector<1x4x256xf32>
    %cst_4 = arith.constant dense<0.000000e+00> : vector<1x256xf32>
    %8 = vector.multi_reduction <add>, %7, %cst_4 [1] : vector<1x4x256xf32> to vector<1x256xf32>
    %9 = vector.shape_cast %8 : vector<1x256xf32> to vector<1x1x256xf32>
    %10 = tpu.reciprocal %9 : vector<1x1x256xf32> -> vector<1x1x256xf32>
    %11 = vector.broadcast %10 : vector<1x1x256xf32> to vector<1x4x256xf32>
    %12 = arith.mulf %7, %11 : vector<1x4x256xf32>
    %c0_5 = arith.constant 0 : index
    %c0_6 = arith.constant 0 : index
    %c0_7 = arith.constant 0 : index
    %13 = vector.load %arg3[%c0_5, %c0_6, %c0_7] : memref<1x4x256xf32, #tpu.memory_space<vmem>>, vector<1x4x256xf32>
    tpu.vector_store %arg3[%c0_5, %c0_6, %c0_7], %12 {strides = array<i32>} : memref<1x4x256xf32, #tpu.memory_space<vmem>>, vector<1x4x256xf32>,
    return
  }
  func.func @transform_0(%arg0: i32, %arg1: i32) -> (i32, i32, i32) {
    %c0_i32 = arith.constant 0 : i32
    %c0_i32_0 = arith.constant 0 : i32
    return %arg0, %c0_i32, %arg1 : i32, i32, i32
  }
  func.func @transform_1(%arg0: i32, %arg1: i32) -> (i32, i32, i32) {
    %c0_i32 = arith.constant 0 : i32
    %c0_i32_0 = arith.constant 0 : i32
    return %arg0, %c0_i32, %arg1 : i32, i32, i32
  }
}

</mosaic_0001>

<bundles_post_ra>
// kernel: tpu_custom_call.1
= control target key start
LH: loop header
LB: loop body
LE: loop exit
PB: predicated region body
PF: predicated region fallthrough
CT: control target
= control target key end

     0   :  { %6 = vsyncpa [#allocation3], 0  ;;  %s663_s0 = inlined_call_operand.hbm [shape: f32[2,4,256], index: 0, kind: input, shape index: {}]   ;;  %s664_s1 = inlined_call_operand.hbm [shape: f32[2,4,256], index: 1, kind: output, shape index: {}]  }
   0x1   :  { %8 = vsyncpa [#allocation3 + $0x1], 0 }
   0x2   :  { %9 = vsyncpa [#allocation4], 0 }
   0x3   :  { %11 = vsyncpa [#allocation4 + $0x1], 0  ;;  %s530_s6 = smov 0   ;;  %s532_s7 = smov 0  }
   0x4   :  { %s534_s8 = smov 0   ;;  %s536_s9 = smov 0  }
   0x5   :  { %s538_s10 = smov 0   ;;  %s540_s11 = smov 0  }
   0x6 LB: > { %s320_s12 = sadd.s32 4294967295, %s518_s11   ;;  %s321_s13 = sadd.s32 4294967294, %s518_s11   ;;  %s518_s11 = sphi %s540_s11, %s17_s11   ;;  %s514_s10 = sphi %s538_s10, %s675_s10   ;;  %s510_s9 = sphi %s536_s9, %s674_s9   ;;  %s506_s8 = sphi %s534_s8, %s673_s8   ;;  %s502_s7 = sphi %s532_s7, %s672_s7   ;;  %s498_s6 = sphi %s530_s6, %s671_s6  }
   0x7   : > { %s29_s14 = sadd.s32 1, %s514_s10  ;;  %s38_s15 = sadd.s32 1, %s506_s8 }
   0x8   : > { %p31_p0 = scmp.ge.s32.totalorder %s29_s14, 2  ;;  %p45_p1 = scmp.ne.s32.totalorder %s506_s8, %s502_s7 }
   0x9   : > { %p46_p2 = scmp.eq.s32.totalorder %s518_s11, 0  ;;  %p51_p3 = scmp.ne.s32.totalorder %s502_s7, %s498_s6 }
   0xa   : > { %s677_s14 = smov (%p31_p0, %s29_s14), 0  ;;  %p52_p5 = scmp.eq.s32.totalorder %s320_s12, 0 }
   0xb   : > { %p571_p4 = por %p46_p2, %p45_p1  ;;  %s33_s17 = ssub.s32 %s514_s10, %s677_s14 }
   0xc   : > { %p77_p6 = scmp.eq.s32.totalorder %s320_s12, 1  ;;  %p36_p7 = scmp.eq.s32.totalorder %s33_s17, 0 }
   0xd   : > { %p577_p8 = por %p52_p5, %p51_p3  ;;  %p83_p10 = scmp.eq.s32.totalorder %s321_s13, 1 }
   0xe   : > { %p581_p9 = por %p77_p6, %p45_p1  ;;  %p323_p12 = scmp.ge.s32.totalorder %s518_s11, 2 }
   0xf   : > { %s586_s20 = scalar_select %p36_p7, %s506_s8, %s38_s15  }
  0x10   : > { %p588_p11 = por %p83_p10, %p51_p3  ;;  %p350_p13 = scmp.lt.s32.totalorder %s518_s11, 2 }
  0x11   : > { %s103_s22 = sand.u32 1, %s506_s8   ;;  %s336_s24 = sshll.u32 %s514_s10, 3 }
  0x12   : > { %s324_s23 = sshll.u32 %s103_s22, 3  ;;  %s114_s27 = scalar_lea.hbm %s663_s0, %s336_s24 }
  0x13   : > { %s107_s28 = scalar_lea.vmem [#allocation2], %s324_s23  ;;  %s116_s30 = sshll.u32 %s114_s27, 4  ;;  %s117_s30 = int_to_ptr.hbm [resolvable:$true] %s116_s30 }
  0x14   : > { %s118_s29 = sshll.u32 %s107_s28, 4  ;;  %p343_p0 = pnand %p350_p13, %p571_p4  ;;  %s119_s29 = int_to_ptr.vmem [resolvable:$true] %s118_s29 }
  0x15   : > { %p327_p1 = scmp.ge.s32.totalorder %s518_s11, 1  ;;  %p123_p2 = scmp.lt.s32.totalorder %s518_s11, 3 }
  0x16   : > { %s104_s2 = scalar_lea.sflag [#allocation3], %s103_s22 }
  0x17   : > { %345 = dma.hbm_to_vmem [thread:$0]  (!%p343_p0), %s117_s30, 128, %s119_s29, %s104_s2  }
  0x18   : > { %p124_p3 = pnand %p327_p1, %p123_p2 }
  0x19   : > { %s604_s3 = sand.u32 (!%p124_p3), 1, %s502_s7  }
  0x1a   : > { %127 = sbr.rel (%p124_p3) target bundleno = 93 (0x5d), region = 24  ;;  %s328_s4 = sshll.u32 (!%p124_p3), %s604_s3, 3 }
  0x1b   : > { %s130_s5 = scalar_lea.sflag (!%p124_p3), [#allocation3], %s604_s3  ;;  %s133_s12 = scalar_lea.vmem (!%p124_p3), [#allocation2], %s328_s4 }
  0x1f   : > { %489 = dma.done.wait (%p577_p8), %s130_s5, 128  }
  0x20   : > { %491 = vsyncadd (%p577_p8), %s130_s5, 4294967168  ;;  %v155_v0 = vld [vmem:[%s133_s12] sm:$0xff]  ;;  %vm167_vm0 = vcmask 1043456   ;;  %s337_s13 = sshll.u32 %s510_s9, 3  ;;  %s152_s9 = scalar_lea.vmem [#allocation5], %s328_s4 }
  0x21   : > { %v156_v1 = vmul.f32 2.5, %v155_v0  ;;  %s231_s17 = scalar_lea.hbm %s664_s1, %s337_s13  ;;  %s233_s18 = sshll.u32 %s152_s9, 4  ;;  %s234_s18 = int_to_ptr.vmem [resolvable:$true] %s233_s18 }
  0x22   : > { %s235_s22 = sshll.u32 %s231_s17, 4  ;;  %s218_s23 = scalar_lea.sflag [#allocation4], %s604_s3  ;;  %s236_s22 = int_to_ptr.hbm [resolvable:$true] %s235_s22 }
  0x23   : > { %v330_v2 = vclamps-f32 %v156_v1, 88.7  ;;  %s450_s24 = sshra.s32 %s236_s22, 4  ;;  %s456_s28 = scalar_lea.hbm %s664_s1, 16  ;;  %s451_s24 = int_to_ptr.hbm [resolvable:$true] %s450_s24 }
  0x24   : > { %s452_s25 = scalar_lea.hbm %s451_s24, 8  ;;  %p457_p7 = scmp.lt.s32.totalorder %s451_s24, %s664_s1 }
  0x25   : > { %v159_v3 = vmul.f32 1.442695, %v330_v2  ;;  %p453_p4 = scmp.ne.s32.totalorder %s451_s24, %s452_s25  ;;  %p458_p8 = scmp.lt.s32.totalorder %s456_s28, %s452_s25 }
  0x27   : > { %400 = vpow2.f32 %v159_v3  ;;  %p454_p5 = pnand %p453_p4, %p581_p9  ;;  %p459_p10 = por %p458_p8, %p457_p7 }
  0x29   : > { %p455_p6 = pneg %p454_p5 }
  0x2b   : > { %p460_p13 = pnand %p459_p10, %p455_p6 }
  0x2d   : > { %v401_v4 = vpop.eup %400 }
  0x2e   : > { %162 = vst [vmem:[#allocation1] ss:$2 sm:$0xff] %v401_v4 }
  0x35   : > { %v163_v5 = vld.sshfl [vmem:[#allocation1] sm:$0xff pattern:$0x75316420]  ;;  %v164_v6 = vld.sshfl [vmem:[#allocation1 + $0x8] sm:$0xff pattern:$0x75316420] }
  0x36   : > { %v168_v7 = vsel %vm167_vm0, %v163_v5, 0.0  ;;  %v175_v8 = vsel %vm167_vm0, %v164_v6, 0.0 }
  0x37   : > { %v169_v9 = vrot.slane %v168_v7, 4  ;;  %v176_v10 = vrot.slane %v175_v8, 4 }
  0x39   : > { %v170_v11 = vadd.f32 %v169_v9, %v168_v7  ;;  %v177_v12 = vadd.f32 %v176_v10, %v175_v8 }
  0x3b   : > { %v171_v13 = vrot.slane %v170_v11, 2  ;;  %v178_v14 = vrot.slane %v177_v12, 2 }
  0x3d   : > { %v172_v15 = vadd.f32 %v171_v13, %v170_v11  ;;  %v179_v16 = vadd.f32 %v178_v14, %v177_v12 }
  0x3f   : > { %v173_v17 = vrot.slane %v172_v15, 1  ;;  %v180_v18 = vrot.slane %v179_v16, 1 }
  0x41   : > { %v174_v19 = vadd.f32 %v173_v17, %v172_v15  ;;  %v181_v20 = vadd.f32 %v180_v18, %v179_v16 }
  0x43   : > { %402 = vrcp.f32 %v174_v19  ;;  %v207_v28 = vand.u32 2147483648, %v181_v20  ;;  %v205_v30 = vand.u32 2147483647, %v181_v20  ;;  %vm187_vm3 = vweird.f32 %v174_v19 }
  0x44   : > { %404 = vrcp.f32 %v181_v20  ;;  %v193_v32 = vand.u32 2147483648, %v174_v19  ;;  %v191_v34 = vand.u32 2147483647, %v174_v19  ;;  %vm201_vm5 = vweird.f32 %v181_v20 }
  0x45   : > { %v208_v36 = vor.u32 1.1754944e-38, %v207_v28  ;;  %vm206_vm7 = vcmp.eq.f32.partialorder %v205_v30, 8.507059e+37 }
  0x46   : > { %v194_v39 = vor.u32 1.1754944e-38, %v193_v32  ;;  %vm192_vm8 = vcmp.eq.f32.partialorder %v191_v34, 8.507059e+37 }
  0x49   : > { %v403_v21 = vpop.eup %402 }
  0x4a   : > { %v405_v22 = vpop.eup %404  ;;  %v183_v23 = vmul.f32 %v403_v21, %v174_v19  ;;  %vm188_vm1 = vweird.f32 %v403_v21 }
  0x4b   : > { %v197_v24 = vmul.f32 %v405_v22, %v181_v20  ;;  %vm202_vm2 = vweird.f32 %v405_v22  ;;  %vm617_vm4 = vmor %vm187_vm3, %vm188_vm1 }
  0x4c   : > { %v184_v25 = vsub.f32 1.0, %v183_v23  ;;  %vm203_vm6 = vmor %vm201_vm5, %vm202_vm2 }
  0x4d   : > { %v198_v26 = vsub.f32 1.0, %v197_v24 }
  0x4e   : > { %v185_v27 = vmul.f32 %v403_v21, %v184_v25 }
  0x4f   : > { %v199_v29 = vmul.f32 %v405_v22, %v198_v26 }
  0x50   : > { %v186_v31 = vadd.f32 %v403_v21, %v185_v27 }
  0x51   : > { %v200_v35 = vadd.f32 %v405_v22, %v199_v29 }
  0x52   : > { %v190_v37 = vsel %vm617_vm4, %v403_v21, %v186_v31 }
  0x53   : > { %v204_v38 = vsel %vm203_vm6, %v405_v22, %v200_v35  ;;  %v195_v42 = vsel %vm192_vm8, %v194_v39, %v190_v37 }
  0x54   : > { %v209_v40 = vsel %vm206_vm7, %v208_v36, %v204_v38 }
  0x55   : > { %v212_v41 = vrot.slane %v209_v40, 4 }
  0x57   : > { %v213_v43 = vsel %vm167_vm0, %v195_v42, %v212_v41 }
  0x58   : > { %v215_v44 = vmul.f32 %v401_v4, %v213_v43 }
  0x5a   : > { %216 = vst [vmem:[%s152_s9] sm:$0xff] %v215_v44 }
  0x5b   : > { %463 = shalt.err (!%p460_p13)
}
  0x5c   : > { %340 = dma.vmem_to_hbm [thread:$0]  (%p581_p9), %s234_s18, 128, %s236_s22, %s218_s23  }
  0x5d PF: > { %s247_s2 = sand.u32 1, %s498_s6   ;;  %p347_p0 = pnand %p323_p12, %p588_p11 }
  0x5e   : > { %s248_s3 = scalar_lea.sflag [#allocation4], %s247_s2 }
  0x5f   : > { %p348_p1 = pneg %p347_p0 }
  0x61   : > { %493 = dma.done.wait (%p348_p1), %s248_s3, 128  }
  0x62   : > { %495 = vsyncadd (%p348_p1), %s248_s3, 4294967168  ;;  %s17_s11 = sadd.s32 1, %s518_s11   ;;  %s671_s6 = smov %s502_s7 }
  0x63   : > { %p14_p2 = scmp.ge.s32.totalorder %s17_s11, 4   ;;  %s672_s7 = smov %s506_s8 }
  0x64   : > { %s673_s8 = smov %s586_s20  ;;  %s674_s9 = smov %s514_s10 }
  0x65   : > { %s675_s10 = smov %s677_s14  ;;  %16 = sbr.rel (!%p14_p2) target bundleno = 6 (0x6), region = 69 }
  0x6a   :  { %254 = vsyncpa [#allocation3], 1 }
  0x6b   :  { %256 = vsyncpa [#allocation3 + $0x1], 1 }
  0x6c   :  { %257 = vsyncpa [#allocation4], 1 }
  0x6d   :  { %259 = vsyncpa [#allocation4 + $0x1], 1 }

</bundles_post_ra>
